<compile_context>
chip_gen: v5e
topology: v5e:2x2
jax: 0.10.0
libtpu: 0.0.40
codegen_flags: <defaults>
</compile_context>

<pallas_src>
import functools
from dataclasses import dataclass
from typing import List

import jax
import jax.numpy as jnp
from jax.experimental import pallas as pl
from jax.experimental.pallas import tpu as pltpu

_LN_EPS = 1e-5
_LANE = 128            # TPU lane width (last dim)
_ROW_ALIGN = 16        # sublane alignment for bf16-packed rows
_MAX_M_TILE = 512      # batch tile when batch is large (v6e: fewer, bigger steps)
_MIN_SPLIT_ROWS = 256  # v7x: only split compute-bound batches above this many rows


def _round_up(n: int, m: int) -> int:
    return ((n + m - 1) // m) * m


_VMEM_CAP_CACHE = [None]


def _vmem_capacity_bytes() -> int:
    if _VMEM_CAP_CACHE[0] is None:
        try:
            _VMEM_CAP_CACHE[0] = int(pltpu.get_tpu_info().vmem_capacity_bytes)
        except Exception:
            _VMEM_CAP_CACHE[0] = 64 * 2**20   # conservative (v7x per-core VMEM)
    return _VMEM_CAP_CACHE[0]


@dataclass(frozen=True)
class _LayerCfg:
    n_real: int      # real output features of this layer
    n_pad: int       # lane-padded output features
    use_bias: bool
    use_ln: bool
    use_relu: bool
    has_mask: bool   # LN layer with n_real < n_pad -> packed mask row present

    @property
    def n_param_rows(self) -> int:
        return ((1 if self.use_bias else 0)
                + (2 if self.use_ln else 0)
                + (1 if self.has_mask else 0))


# ------------------------------ fused Pallas kernel ------------------------------
def _fused_mlp_kernel(*refs, layer_cfgs, compute_dtype):
    """refs = (x_ref, [w_ref, (packed_params_ref)?] * n_layers, o_ref)."""
    x_ref, o_ref = refs[0], refs[-1]
    layer_refs = refs[1:-1]

    h = x_ref[...]                      # bf16 activation carried between layers
    ri = 0
    n_layers = len(layer_cfgs)
    for li, cfg in enumerate(layer_cfgs):
        w_ref = layer_refs[ri]
        ri += 1
        p = None
        if cfg.n_param_rows > 0:
            p = layer_refs[ri][...]     # f32 packed rows: [bias?, gamma?, beta?, mask?]
            ri += 1

        # MXU matmul: bf16 operands, f32 accumulation.
        y = jnp.dot(h, w_ref[...], preferred_element_type=jnp.float32)

        row = 0
        if cfg.use_bias:
            y = y + p[row:row + 1, :]          # (1, N_pad) broadcast over rows
            row += 1
        if cfg.use_ln:
            gamma = p[row:row + 1, :]
            beta = p[row + 1:row + 2, :]
            row += 2
            inv_n = 1.0 / float(cfg.n_real)
            # Padded columns of y are exactly zero (zero weight cols / zero bias),
            # so the sum over the padded width equals the sum over the real cols.
            mean = jnp.sum(y, axis=-1, keepdims=True) * inv_n
            diff = y - mean
            if cfg.has_mask:
                diff = diff * p[row:row + 1, :]   # zero padded cols before variance
                row += 1
            var = jnp.sum(diff * diff, axis=-1, keepdims=True) * inv_n
            # gamma/beta are zero in padded columns -> padded cols stay zero.
            y = diff * jax.lax.rsqrt(var + _LN_EPS) * gamma + beta
        if cfg.use_relu:
            y = jnp.maximum(y, 0.0)

        # Carry in bf16 (halves vreg/spill pressure); keep the last layer in f32
        # so the output is not needlessly quantized.
        h = y.astype(compute_dtype) if li + 1 < n_layers else y

    o_ref[...] = h.astype(o_ref.dtype)


# --------------------------------- MLP wrapper -----------------------------------
class MLPPallas:
    """Plain MLP (Linear+LN+ReLU hidden layers, Linear output) as one fused kernel."""

    def __init__(self, sizes: List[int], key, use_biases: bool = True,
                 use_layer_norm: bool = True, init_scaling: float = 0.1,
                 compute_dtype=jnp.bfloat16):
        assert len(sizes) >= 2
        self.sizes = [int(s) for s in sizes]
        self.compute_dtype = compute_dtype
        n_layers = len(self.sizes) - 1

        cfgs, weights, packed = [], [], []
        for i in range(n_layers):
            key, kw, kb = jax.random.split(key, 3)
            fan_in, fan_out = self.sizes[i], self.sizes[i + 1]
            k_pad, n_pad = _round_up(fan_in, _LANE), _round_up(fan_out, _LANE)
            is_hidden = i < n_layers - 1
            use_ln = bool(use_layer_norm and is_hidden)
            has_mask = bool(use_ln and fan_out < n_pad)

            w = init_scaling * jax.random.normal(kw, (fan_in, fan_out), jnp.float32)
            # NOTE: padded rows/cols MUST stay exactly zero (LN-statistics trick).
            w_pad = jnp.zeros((k_pad, n_pad), jnp.float32).at[:fan_in, :fan_out].set(w)
            weights.append(w_pad.astype(compute_dtype))   # bf16 weights in HBM

            rows = []
            if use_biases:
                b = init_scaling * jax.random.normal(kb, (fan_out,), jnp.float32)
                rows.append(jnp.zeros((n_pad,), jnp.float32).at[:fan_out].set(b))
            if use_ln:
                rows.append(jnp.zeros((n_pad,), jnp.float32).at[:fan_out].set(1.0))  # gamma
                rows.append(jnp.zeros((n_pad,), jnp.float32))                        # beta
                if has_mask:
                    rows.append(jnp.zeros((n_pad,), jnp.float32).at[:fan_out].set(1.0))  # mask
            packed.append(jnp.stack(rows, axis=0) if rows else None)

            cfgs.append(_LayerCfg(n_real=fan_out, n_pad=n_pad, use_bias=bool(use_biases),
                                  use_ln=use_ln, use_relu=is_hidden, has_mask=has_mask))

        self.cfgs = tuple(cfgs)
        self.weights = weights
        self.packed = packed
        self._operands = []
        for w, p in zip(weights, packed):
            self._operands.append(w)
            if p is not None:
                self._operands.append(p)

        # static bookkeeping for tiling / VMEM decisions
        self._weight_bytes = (sum(int(w.size) * w.dtype.itemsize for w in weights)
                              + sum(int(p.size) * p.dtype.itemsize
                                    for p in packed if p is not None))
        self._flops_per_row = sum(2 * int(w.shape[0]) * int(w.shape[1]) for w in weights)
        self._fwd_cache = {}

    # ---- fused forward (built per static batch size, then jit-cached) ----
    def _forward(self, batch: int, single_buffer: bool, x, *operands):
        k0_pad = self.weights[0].shape[0]
        n_out = self.sizes[-1]
        n_out_pad = self.cfgs[-1].n_pad
        cdt = self.compute_dtype
        cdt_bytes = jnp.dtype(cdt).itemsize

        # --- M tiling ---
        m_pad = max(_round_up(batch, _ROW_ALIGN), _ROW_ALIGN)
        flops_total = self._flops_per_row * m_pad
        if m_pad > _MAX_M_TILE:
            tile_m = _MAX_M_TILE
        elif m_pad >= _MIN_SPLIT_ROWS and flops_total > 8 * self._weight_bytes:
            # compute-bound: >=2 grid steps so v7x's 2nd TensorCore gets work.
            tile_m = _round_up((m_pad + 1) // 2, _ROW_ALIGN)
        else:
            tile_m = m_pad                      # one step: no sequential-grid overhead
        m_pad = _round_up(m_pad, tile_m)
        grid = (m_pad // tile_m,)

        # bf16 input pad: the only operand that streams per grid step.
        x_pad = jnp.zeros((m_pad, k0_pad), cdt)
        x_pad = x_pad.at[:batch, :self.sizes[0]].set(x.astype(cdt))

        # --- specs + advisory cost ---
        def _invariant_spec(shape):
            # grid-invariant block: single-buffer it when supported.
            if single_buffer:
                return pl.BlockSpec(shape, lambda i: (0, 0),
                                    pipeline_mode=pl.Buffered(1))
            return pl.BlockSpec(shape, lambda i: (0, 0))

        in_specs = [pl.BlockSpec((tile_m, k0_pad), lambda i: (i, 0))]
        flops = 0
        transcendentals = 0
        bytes_accessed = m_pad * k0_pad * cdt_bytes
        for w, p, cfg in zip(self.weights, self.packed, self.cfgs):
            in_specs.append(_invariant_spec(tuple(w.shape)))
            bytes_accessed += int(w.size) * w.dtype.itemsize
            if p is not None:
                in_specs.append(_invariant_spec(tuple(p.shape)))
                bytes_accessed += int(p.size) * p.dtype.itemsize
            flops += 2 * m_pad * int(w.shape[0]) * int(w.shape[1])   # padded (advisory)
            if cfg.use_ln:
                transcendentals += m_pad      # one rsqrt per row
        bytes_accessed += m_pad * n_out_pad * 4

        # --- VMEM budget: footprint + 30% headroom, capped at ~90% of physical ---
        buf_w = 1 if single_buffer else 2
        max_n_pad = max(c.n_pad for c in self.cfgs)
        footprint = (buf_w * self._weight_bytes
                     + 2 * tile_m * k0_pad * cdt_bytes        # double-buffered x tile
                     + 2 * tile_m * n_out_pad * 4             # double-buffered out tile
                     + 4 * tile_m * max_n_pad * 4)            # activation working set
        vmem_limit = int(min(max(footprint * 1.3, 16 * 2**20),
                             0.9 * _vmem_capacity_bytes()))

        kernel = functools.partial(_fused_mlp_kernel, layer_cfgs=self.cfgs,
                                   compute_dtype=cdt)
        y_pad = pl.pallas_call(
            kernel,
            out_shape=jax.ShapeDtypeStruct((m_pad, n_out_pad), jnp.float32),
            grid=grid,
            in_specs=in_specs,
            out_specs=pl.BlockSpec((tile_m, n_out_pad), lambda i: (i, 0)),
            compiler_params=pltpu.CompilerParams(
                dimension_semantics=("parallel",),     # megacore sharding on v7x
                vmem_limit_bytes=vmem_limit),
            cost_estimate=pl.CostEstimate(flops=flops,
                                          transcendentals=transcendentals,
                                          bytes_accessed=bytes_accessed),
        )(x_pad, *operands)
        return y_pad[:batch, :n_out]

    def __call__(self, x):
        assert x.ndim == 2 and x.shape[1] == self.sizes[0]
        batch = int(x.shape[0])
        fwd = self._fwd_cache.get(batch)
        if fwd is not None:
            return fwd(x, *self._operands)
        # Prefer single-buffered invariant weights; fall back transparently if the
        # running jax build rejects pipeline_mode=pl.Buffered(1).
        last_err = None
        for single_buffer in (True, False):
            cand = jax.jit(functools.partial(self._forward, batch, single_buffer))
            try:
                out = cand(x, *self._operands)
                jax.block_until_ready(out)
            except Exception as e:          # noqa: BLE001 - fallback path
                last_err = e
                continue
            self._fwd_cache[batch] = cand
            return out
        raise last_err


def _reference_forward(mlp: MLPPallas, x):
    """Pure-JAX reference using the same bf16-quantized-input / f32-accum matmul."""
    h = x.astype(jnp.float32)
    for i, (w, p, cfg) in enumerate(zip(mlp.weights, mlp.packed, mlp.cfgs)):
        k_real, n_real = mlp.sizes[i], cfg.n_real
        w_f = w[:k_real, :n_real].astype(jnp.float32)
        y = jnp.dot(h.astype(mlp.compute_dtype).astype(jnp.float32), w_f)
        row = 0
        if cfg.use_bias:
            y = y + p[row, :n_real][None, :]
            row += 1
        if cfg.use_ln:
            gamma = p[row, :n_real][None, :]
            beta = p[row + 1, :n_real][None, :]
            mean = jnp.mean(y, axis=-1, keepdims=True)
            var = jnp.mean(jnp.square(y - mean), axis=-1, keepdims=True)
            y = (y - mean) * jax.lax.rsqrt(var + _LN_EPS) * gamma + beta
        if cfg.use_relu:
            y = jnp.maximum(y, 0.0)
        h = y
    return h


class MLPListPallas:
    """JAX/Pallas analogue of MLP_LIST: forward(index, x) -> mlps[index](x)."""
    # TODO(synk): ResidualMLP's LinearBlock definition is not provided upstream;
    # this list holds plain (fused) MLPs only, with the same forward(index, x)
    # semantics. train()/eval()/parameters()/to() are torch-stateful and omitted.

    def __init__(self, mlps):
        self.mlps = list(mlps)

    def __len__(self):
        return len(self.mlps)

    def __getitem__(self, index):
        return self.mlps[index]

    def append(self, mlp):
        self.mlps.append(mlp)
        return self

    def forward(self, index, x):
        return self.mlps[index](x)


# ------------------------------------- main --------------------------------------
if __name__ == "__main__":
    key = jax.random.PRNGKey(0)
    k_in, k_m0, k_m1 = jax.random.split(key, 3)

    batch, in_dim = 8, 16
    x = jax.random.normal(k_in, (batch, in_dim), jnp.float32)

    mlp0 = MLPPallas([in_dim, 32, 32, 8], k_m0)   # 2 hidden (LN+ReLU) + output layer
    mlp1 = MLPPallas([in_dim, 64, 8], k_m1)       # 1 hidden (LN+ReLU) + output layer
    mlp_list = MLPListPallas([mlp0, mlp1])

    y0 = mlp_list.forward(0, x)
    y1 = mlp_list.forward(1, x)
    jax.block_until_ready((y0, y1))

    # shapes match what the torch module would produce
    assert y0.shape == (batch, 8) and y1.shape == (batch, 8)

    # numerical sanity vs a pure-JAX reference (same bf16 matmul quantization)
    r0 = _reference_forward(mlp0, x)
    r1 = _reference_forward(mlp1, x)
    assert float(jnp.max(jnp.abs(y0 - r0))) < 1e-2
    assert float(jnp.max(jnp.abs(y1 - r1))) < 1e-2

    print("KERNEL_OK")
</pallas_src>

<mosaic_0001>
module attributes {stable_mosaic.version = 11 : i64} {
  func.func @_fused_mlp_kernel(%arg0: i32, %arg1: memref<16x128xbf16, #tpu.memory_space<vmem>>, %arg2: memref<128x128xbf16, #tpu.memory_space<vmem>>, %arg3: memref<4x128xf32, #tpu.memory_space<vmem>>, %arg4: memref<128x128xbf16, #tpu.memory_space<vmem>>, %arg5: memref<4x128xf32, #tpu.memory_space<vmem>>, %arg6: memref<128x128xbf16, #tpu.memory_space<vmem>>, %arg7: memref<1x128xf32, #tpu.memory_space<vmem>>, %arg8: memref<16x128xf32, #tpu.memory_space<vmem>>) attributes {dimension_semantics = [#tpu.dimension_semantics<parallel>], iteration_bounds = array<i64: 1>, scalar_prefetch = 0 : i64, scratch_operands = 0 : i64, tpu.core_type = #tpu.core_type<tc>, window_params = [{transform_indices = @transform_0, window_bounds = array<i64: 16, 128>}, {pipeline_mode = #tpu.pipeline_mode<synchronous>, transform_indices = @transform_1, window_bounds = array<i64: 128, 128>}, {pipeline_mode = #tpu.pipeline_mode<synchronous>, transform_indices = @transform_2, window_bounds = array<i64: 4, 128>}, {pipeline_mode = #tpu.pipeline_mode<synchronous>, transform_indices = @transform_3, window_bounds = array<i64: 128, 128>}, {pipeline_mode = #tpu.pipeline_mode<synchronous>, transform_indices = @transform_4, window_bounds = array<i64: 4, 128>}, {pipeline_mode = #tpu.pipeline_mode<synchronous>, transform_indices = @transform_5, window_bounds = array<i64: 128, 128>}, {pipeline_mode = #tpu.pipeline_mode<synchronous>, transform_indices = @transform_6, window_bounds = array<i64: 1, 128>}, {transform_indices = @transform_7, window_bounds = array<i64: 16, 128>}]} {
    %c0 = arith.constant 0 : index
    %c0_0 = arith.constant 0 : index
    %0 = vector.load %arg1[%c0, %c0_0] : memref<16x128xbf16, #tpu.memory_space<vmem>>, vector<16x128xbf16>
    %c0_1 = arith.constant 0 : index
    %c0_2 = arith.constant 0 : index
    %1 = vector.load %arg3[%c0_1, %c0_2] : memref<4x128xf32, #tpu.memory_space<vmem>>, vector<4x128xf32>
    %c0_3 = arith.constant 0 : index
    %c0_4 = arith.constant 0 : index
    %2 = vector.load %arg2[%c0_3, %c0_4] : memref<128x128xbf16, #tpu.memory_space<vmem>>, vector<128x128xbf16>
    %cst = arith.constant dense<0.000000e+00> : vector<16x128xf32>
    %3 = tpu.matmul %0, %2, %cst {dimension_numbers = #tpu.dot_dimension_numbers<[1], [0], [0], [1], [0, 0, 1, 1], [], []>} : vector<16x128xbf16>, vector<128x128xbf16>, vector<16x128xf32> -> vector<16x128xf32>
    %4 = vector.extract_strided_slice %1 {offsets = [0, 0], sizes = [1, 128], strides = [1, 1]} : vector<4x128xf32> to vector<1x128xf32>
    %5 = vector.broadcast %4 : vector<1x128xf32> to vector<16x128xf32>
    %6 = arith.addf %3, %5 : vector<16x128xf32>
    %7 = vector.extract_strided_slice %1 {offsets = [1, 0], sizes = [1, 128], strides = [1, 1]} : vector<4x128xf32> to vector<1x128xf32>
    %8 = vector.extract_strided_slice %1 {offsets = [2, 0], sizes = [1, 128], strides = [1, 1]} : vector<4x128xf32> to vector<1x128xf32>
    %cst_5 = arith.constant dense<0.000000e+00> : vector<16xf32>
    %9 = vector.multi_reduction <add>, %6, %cst_5 [1] : vector<16x128xf32> to vector<16xf32>
    %10 = vector.shape_cast %9 : vector<16xf32> to vector<16x1xf32>
    %cst_6 = arith.constant 3.125000e-02 : f32
    %11 = vector.broadcast %cst_6 : f32 to vector<16x1xf32>
    %12 = arith.mulf %10, %11 : vector<16x1xf32>
    %13 = vector.broadcast %12 : vector<16x1xf32> to vector<16x128xf32>
    %14 = arith.subf %6, %13 : vector<16x128xf32>
    %15 = vector.extract_strided_slice %1 {offsets = [3, 0], sizes = [1, 128], strides = [1, 1]} : vector<4x128xf32> to vector<1x128xf32>
    %16 = vector.broadcast %15 : vector<1x128xf32> to vector<16x128xf32>
    %17 = arith.mulf %14, %16 : vector<16x128xf32>
    %18 = arith.mulf %17, %17 : vector<16x128xf32>
    %cst_7 = arith.constant dense<0.000000e+00> : vector<16xf32>
    %19 = vector.multi_reduction <add>, %18, %cst_7 [1] : vector<16x128xf32> to vector<16xf32>
    %20 = vector.shape_cast %19 : vector<16xf32> to vector<16x1xf32>
    %cst_8 = arith.constant 3.125000e-02 : f32
    %21 = vector.broadcast %cst_8 : f32 to vector<16x1xf32>
    %22 = arith.mulf %20, %21 : vector<16x1xf32>
    %cst_9 = arith.constant 9.99999974E-6 : f32
    %23 = vector.broadcast %cst_9 : f32 to vector<16x1xf32>
    %24 = arith.addf %22, %23 : vector<16x1xf32>
    %25 = math.rsqrt %24 : vector<16x1xf32>
    %26 = vector.broadcast %25 : vector<16x1xf32> to vector<16x128xf32>
    %27 = arith.mulf %17, %26 : vector<16x128xf32>
    %28 = vector.broadcast %7 : vector<1x128xf32> to vector<16x128xf32>
    %29 = arith.mulf %27, %28 : vector<16x128xf32>
    %30 = vector.broadcast %8 : vector<1x128xf32> to vector<16x128xf32>
    %31 = arith.addf %29, %30 : vector<16x128xf32>
    %cst_10 = arith.constant 0.000000e+00 : f32
    %32 = vector.broadcast %cst_10 : f32 to vector<16x128xf32>
    %33 = arith.maximumf %31, %32 : vector<16x128xf32>
    %34 = arith.truncf %33 : vector<16x128xf32> to vector<16x128xbf16>
    %c0_11 = arith.constant 0 : index
    %c0_12 = arith.constant 0 : index
    %35 = vector.load %arg5[%c0_11, %c0_12] : memref<4x128xf32, #tpu.memory_space<vmem>>, vector<4x128xf32>
    %c0_13 = arith.constant 0 : index
    %c0_14 = arith.constant 0 : index
    %36 = vector.load %arg4[%c0_13, %c0_14] : memref<128x128xbf16, #tpu.memory_space<vmem>>, vector<128x128xbf16>
    %cst_15 = arith.constant dense<0.000000e+00> : vector<16x128xf32>
    %37 = tpu.matmul %34, %36, %cst_15 {dimension_numbers = #tpu.dot_dimension_numbers<[1], [0], [0], [1], [0, 0, 1, 1], [], []>} : vector<16x128xbf16>, vector<128x128xbf16>, vector<16x128xf32> -> vector<16x128xf32>
    %38 = vector.extract_strided_slice %35 {offsets = [0, 0], sizes = [1, 128], strides = [1, 1]} : vector<4x128xf32> to vector<1x128xf32>
    %39 = vector.broadcast %38 : vector<1x128xf32> to vector<16x128xf32>
    %40 = arith.addf %37, %39 : vector<16x128xf32>
    %41 = vector.extract_strided_slice %35 {offsets = [1, 0], sizes = [1, 128], strides = [1, 1]} : vector<4x128xf32> to vector<1x128xf32>
    %42 = vector.extract_strided_slice %35 {offsets = [2, 0], sizes = [1, 128], strides = [1, 1]} : vector<4x128xf32> to vector<1x128xf32>
    %cst_16 = arith.constant dense<0.000000e+00> : vector<16xf32>
    %43 = vector.multi_reduction <add>, %40, %cst_16 [1] : vector<16x128xf32> to vector<16xf32>
    %44 = vector.shape_cast %43 : vector<16xf32> to vector<16x1xf32>
    %cst_17 = arith.constant 3.125000e-02 : f32
    %45 = vector.broadcast %cst_17 : f32 to vector<16x1xf32>
    %46 = arith.mulf %44, %45 : vector<16x1xf32>
    %47 = vector.broadcast %46 : vector<16x1xf32> to vector<16x128xf32>
    %48 = arith.subf %40, %47 : vector<16x128xf32>
    %49 = vector.extract_strided_slice %35 {offsets = [3, 0], sizes = [1, 128], strides = [1, 1]} : vector<4x128xf32> to vector<1x128xf32>
    %50 = vector.broadcast %49 : vector<1x128xf32> to vector<16x128xf32>
    %51 = arith.mulf %48, %50 : vector<16x128xf32>
    %52 = arith.mulf %51, %51 : vector<16x128xf32>
    %cst_18 = arith.constant dense<0.000000e+00> : vector<16xf32>
    %53 = vector.multi_reduction <add>, %52, %cst_18 [1] : vector<16x128xf32> to vector<16xf32>
    %54 = vector.shape_cast %53 : vector<16xf32> to vector<16x1xf32>
    %cst_19 = arith.constant 3.125000e-02 : f32
    %55 = vector.broadcast %cst_19 : f32 to vector<16x1xf32>
    %56 = arith.mulf %54, %55 : vector<16x1xf32>
    %cst_20 = arith.constant 9.99999974E-6 : f32
    %57 = vector.broadcast %cst_20 : f32 to vector<16x1xf32>
    %58 = arith.addf %56, %57 : vector<16x1xf32>
    %59 = math.rsqrt %58 : vector<16x1xf32>
    %60 = vector.broadcast %59 : vector<16x1xf32> to vector<16x128xf32>
    %61 = arith.mulf %51, %60 : vector<16x128xf32>
    %62 = vector.broadcast %41 : vector<1x128xf32> to vector<16x128xf32>
    %63 = arith.mulf %61, %62 : vector<16x128xf32>
    %64 = vector.broadcast %42 : vector<1x128xf32> to vector<16x128xf32>
    %65 = arith.addf %63, %64 : vector<16x128xf32>
    %cst_21 = arith.constant 0.000000e+00 : f32
    %66 = vector.broadcast %cst_21 : f32 to vector<16x128xf32>
    %67 = arith.maximumf %65, %66 : vector<16x128xf32>
    %68 = arith.truncf %67 : vector<16x128xf32> to vector<16x128xbf16>
    %c0_22 = arith.constant 0 : index
    %c0_23 = arith.constant 0 : index
    %69 = vector.load %arg7[%c0_22, %c0_23] : memref<1x128xf32, #tpu.memory_space<vmem>>, vector<1x128xf32>
    %c0_24 = arith.constant 0 : index
    %c0_25 = arith.constant 0 : index
    %70 = vector.load %arg6[%c0_24, %c0_25] : memref<128x128xbf16, #tpu.memory_space<vmem>>, vector<128x128xbf16>
    %cst_26 = arith.constant dense<0.000000e+00> : vector<16x128xf32>
    %71 = tpu.matmul %68, %70, %cst_26 {dimension_numbers = #tpu.dot_dimension_numbers<[1], [0], [0], [1], [0, 0, 1, 1], [], []>} : vector<16x128xbf16>, vector<128x128xbf16>, vector<16x128xf32> -> vector<16x128xf32>
    %72 = vector.broadcast %69 : vector<1x128xf32> to vector<16x128xf32>
    %73 = arith.addf %71, %72 : vector<16x128xf32>
    %c0_27 = arith.constant 0 : index
    %c0_28 = arith.constant 0 : index
    %74 = vector.load %arg8[%c0_27, %c0_28] : memref<16x128xf32, #tpu.memory_space<vmem>>, vector<16x128xf32>
    tpu.vector_store %arg8[%c0_27, %c0_28], %73 {strides = array<i32>} : memref<16x128xf32, #tpu.memory_space<vmem>>, vector<16x128xf32>,
    return
  }
  func.func @transform_0(%arg0: i32) -> (i32, i32) {
    %c0_i32 = arith.constant 0 : i32
    %c0_i32_0 = arith.constant 0 : i32
    return %arg0, %c0_i32 : i32, i32
  }
  func.func @transform_1(%arg0: i32) -> (i32, i32) {
    %c0_i32 = arith.constant 0 : i32
    %c0_i32_0 = arith.constant 0 : i32
    %c0_i32_1 = arith.constant 0 : i32
    return %c0_i32, %c0_i32_0 : i32, i32
  }
  func.func @transform_2(%arg0: i32) -> (i32, i32) {
    %c0_i32 = arith.constant 0 : i32
    %c0_i32_0 = arith.constant 0 : i32
    %c0_i32_1 = arith.constant 0 : i32
    return %c0_i32, %c0_i32_0 : i32, i32
  }
  func.func @transform_3(%arg0: i32) -> (i32, i32) {
    %c0_i32 = arith.constant 0 : i32
    %c0_i32_0 = arith.constant 0 : i32
    %c0_i32_1 = arith.constant 0 : i32
    return %c0_i32, %c0_i32_0 : i32, i32
  }
  func.func @transform_4(%arg0: i32) -> (i32, i32) {
    %c0_i32 = arith.constant 0 : i32
    %c0_i32_0 = arith.constant 0 : i32
    %c0_i32_1 = arith.constant 0 : i32
    return %c0_i32, %c0_i32_0 : i32, i32
  }
  func.func @transform_5(%arg0: i32) -> (i32, i32) {
    %c0_i32 = arith.constant 0 : i32
    %c0_i32_0 = arith.constant 0 : i32
    %c0_i32_1 = arith.constant 0 : i32
    return %c0_i32, %c0_i32_0 : i32, i32
  }
  func.func @transform_6(%arg0: i32) -> (i32, i32) {
    %c0_i32 = arith.constant 0 : i32
    %c0_i32_0 = arith.constant 0 : i32
    %c0_i32_1 = arith.constant 0 : i32
    return %c0_i32, %c0_i32_0 : i32, i32
  }
  func.func @transform_7(%arg0: i32) -> (i32, i32) {
    %c0_i32 = arith.constant 0 : i32
    %c0_i32_0 = arith.constant 0 : i32
    return %arg0, %c0_i32 : i32, i32
  }
}

module attributes {stable_mosaic.version = 11 : i64} {
  func.func @_fused_mlp_kernel(%arg0: i32, %arg1: memref<16x128xbf16, #tpu.memory_space<vmem>>, %arg2: memref<128x128xbf16, #tpu.memory_space<vmem>>, %arg3: memref<4x128xf32, #tpu.memory_space<vmem>>, %arg4: memref<128x128xbf16, #tpu.memory_space<vmem>>, %arg5: memref<4x128xf32, #tpu.memory_space<vmem>>, %arg6: memref<128x128xbf16, #tpu.memory_space<vmem>>, %arg7: memref<1x128xf32, #tpu.memory_space<vmem>>, %arg8: memref<16x128xf32, #tpu.memory_space<vmem>>) attributes {dimension_semantics = [#tpu.dimension_semantics<parallel>], iteration_bounds = array<i64: 1>, scalar_prefetch = 0 : i64, scratch_operands = 0 : i64, tpu.core_type = #tpu.core_type<tc>, window_params = [{transform_indices = @transform_0, window_bounds = array<i64: 16, 128>}, {pipeline_mode = #tpu.pipeline_mode<synchronous>, transform_indices = @transform_1, window_bounds = array<i64: 128, 128>}, {pipeline_mode = #tpu.pipeline_mode<synchronous>, transform_indices = @transform_2, window_bounds = array<i64: 4, 128>}, {pipeline_mode = #tpu.pipeline_mode<synchronous>, transform_indices = @transform_3, window_bounds = array<i64: 128, 128>}, {pipeline_mode = #tpu.pipeline_mode<synchronous>, transform_indices = @transform_4, window_bounds = array<i64: 4, 128>}, {pipeline_mode = #tpu.pipeline_mode<synchronous>, transform_indices = @transform_5, window_bounds = array<i64: 128, 128>}, {pipeline_mode = #tpu.pipeline_mode<synchronous>, transform_indices = @transform_6, window_bounds = array<i64: 1, 128>}, {transform_indices = @transform_7, window_bounds = array<i64: 16, 128>}]} {
    %c0 = arith.constant 0 : index
    %c0_0 = arith.constant 0 : index
    %0 = vector.load %arg1[%c0, %c0_0] : memref<16x128xbf16, #tpu.memory_space<vmem>>, vector<16x128xbf16>
    %c0_1 = arith.constant 0 : index
    %c0_2 = arith.constant 0 : index
    %1 = vector.load %arg3[%c0_1, %c0_2] : memref<4x128xf32, #tpu.memory_space<vmem>>, vector<4x128xf32>
    %c0_3 = arith.constant 0 : index
    %c0_4 = arith.constant 0 : index
    %2 = vector.load %arg2[%c0_3, %c0_4] : memref<128x128xbf16, #tpu.memory_space<vmem>>, vector<128x128xbf16>
    %cst = arith.constant dense<0.000000e+00> : vector<16x128xf32>
    %3 = tpu.matmul %0, %2, %cst {dimension_numbers = #tpu.dot_dimension_numbers<[1], [0], [0], [1], [0, 0, 1, 1], [], []>} : vector<16x128xbf16>, vector<128x128xbf16>, vector<16x128xf32> -> vector<16x128xf32>
    %4 = vector.extract_strided_slice %1 {offsets = [0, 0], sizes = [1, 128], strides = [1, 1]} : vector<4x128xf32> to vector<1x128xf32>
    %5 = vector.broadcast %4 : vector<1x128xf32> to vector<16x128xf32>
    %6 = arith.addf %3, %5 : vector<16x128xf32>
    %7 = vector.extract_strided_slice %1 {offsets = [1, 0], sizes = [1, 128], strides = [1, 1]} : vector<4x128xf32> to vector<1x128xf32>
    %8 = vector.extract_strided_slice %1 {offsets = [2, 0], sizes = [1, 128], strides = [1, 1]} : vector<4x128xf32> to vector<1x128xf32>
    %cst_5 = arith.constant dense<0.000000e+00> : vector<16xf32>
    %9 = vector.multi_reduction <add>, %6, %cst_5 [1] : vector<16x128xf32> to vector<16xf32>
    %10 = vector.shape_cast %9 : vector<16xf32> to vector<16x1xf32>
    %cst_6 = arith.constant 3.125000e-02 : f32
    %11 = vector.broadcast %cst_6 : f32 to vector<16x1xf32>
    %12 = arith.mulf %10, %11 : vector<16x1xf32>
    %13 = vector.broadcast %12 : vector<16x1xf32> to vector<16x128xf32>
    %14 = arith.subf %6, %13 : vector<16x128xf32>
    %15 = vector.extract_strided_slice %1 {offsets = [3, 0], sizes = [1, 128], strides = [1, 1]} : vector<4x128xf32> to vector<1x128xf32>
    %16 = vector.broadcast %15 : vector<1x128xf32> to vector<16x128xf32>
    %17 = arith.mulf %14, %16 : vector<16x128xf32>
    %18 = arith.mulf %17, %17 : vector<16x128xf32>
    %cst_7 = arith.constant dense<0.000000e+00> : vector<16xf32>
    %19 = vector.multi_reduction <add>, %18, %cst_7 [1] : vector<16x128xf32> to vector<16xf32>
    %20 = vector.shape_cast %19 : vector<16xf32> to vector<16x1xf32>
    %cst_8 = arith.constant 3.125000e-02 : f32
    %21 = vector.broadcast %cst_8 : f32 to vector<16x1xf32>
    %22 = arith.mulf %20, %21 : vector<16x1xf32>
    %cst_9 = arith.constant 9.99999974E-6 : f32
    %23 = vector.broadcast %cst_9 : f32 to vector<16x1xf32>
    %24 = arith.addf %22, %23 : vector<16x1xf32>
    %25 = math.rsqrt %24 : vector<16x1xf32>
    %26 = vector.broadcast %25 : vector<16x1xf32> to vector<16x128xf32>
    %27 = arith.mulf %17, %26 : vector<16x128xf32>
    %28 = vector.broadcast %7 : vector<1x128xf32> to vector<16x128xf32>
    %29 = arith.mulf %27, %28 : vector<16x128xf32>
    %30 = vector.broadcast %8 : vector<1x128xf32> to vector<16x128xf32>
    %31 = arith.addf %29, %30 : vector<16x128xf32>
    %cst_10 = arith.constant 0.000000e+00 : f32
    %32 = vector.broadcast %cst_10 : f32 to vector<16x128xf32>
    %33 = arith.maximumf %31, %32 : vector<16x128xf32>
    %34 = arith.truncf %33 : vector<16x128xf32> to vector<16x128xbf16>
    %c0_11 = arith.constant 0 : index
    %c0_12 = arith.constant 0 : index
    %35 = vector.load %arg5[%c0_11, %c0_12] : memref<4x128xf32, #tpu.memory_space<vmem>>, vector<4x128xf32>
    %c0_13 = arith.constant 0 : index
    %c0_14 = arith.constant 0 : index
    %36 = vector.load %arg4[%c0_13, %c0_14] : memref<128x128xbf16, #tpu.memory_space<vmem>>, vector<128x128xbf16>
    %cst_15 = arith.constant dense<0.000000e+00> : vector<16x128xf32>
    %37 = tpu.matmul %34, %36, %cst_15 {dimension_numbers = #tpu.dot_dimension_numbers<[1], [0], [0], [1], [0, 0, 1, 1], [], []>} : vector<16x128xbf16>, vector<128x128xbf16>, vector<16x128xf32> -> vector<16x128xf32>
    %38 = vector.extract_strided_slice %35 {offsets = [0, 0], sizes = [1, 128], strides = [1, 1]} : vector<4x128xf32> to vector<1x128xf32>
    %39 = vector.broadcast %38 : vector<1x128xf32> to vector<16x128xf32>
    %40 = arith.addf %37, %39 : vector<16x128xf32>
    %41 = vector.extract_strided_slice %35 {offsets = [1, 0], sizes = [1, 128], strides = [1, 1]} : vector<4x128xf32> to vector<1x128xf32>
    %42 = vector.extract_strided_slice %35 {offsets = [2, 0], sizes = [1, 128], strides = [1, 1]} : vector<4x128xf32> to vector<1x128xf32>
    %cst_16 = arith.constant dense<0.000000e+00> : vector<16xf32>
    %43 = vector.multi_reduction <add>, %40, %cst_16 [1] : vector<16x128xf32> to vector<16xf32>
    %44 = vector.shape_cast %43 : vector<16xf32> to vector<16x1xf32>
    %cst_17 = arith.constant 3.125000e-02 : f32
    %45 = vector.broadcast %cst_17 : f32 to vector<16x1xf32>
    %46 = arith.mulf %44, %45 : vector<16x1xf32>
    %47 = vector.broadcast %46 : vector<16x1xf32> to vector<16x128xf32>
    %48 = arith.subf %40, %47 : vector<16x128xf32>
    %49 = vector.extract_strided_slice %35 {offsets = [3, 0], sizes = [1, 128], strides = [1, 1]} : vector<4x128xf32> to vector<1x128xf32>
    %50 = vector.broadcast %49 : vector<1x128xf32> to vector<16x128xf32>
    %51 = arith.mulf %48, %50 : vector<16x128xf32>
    %52 = arith.mulf %51, %51 : vector<16x128xf32>
    %cst_18 = arith.constant dense<0.000000e+00> : vector<16xf32>
    %53 = vector.multi_reduction <add>, %52, %cst_18 [1] : vector<16x128xf32> to vector<16xf32>
    %54 = vector.shape_cast %53 : vector<16xf32> to vector<16x1xf32>
    %cst_19 = arith.constant 3.125000e-02 : f32
    %55 = vector.broadcast %cst_19 : f32 to vector<16x1xf32>
    %56 = arith.mulf %54, %55 : vector<16x1xf32>
    %cst_20 = arith.constant 9.99999974E-6 : f32
    %57 = vector.broadcast %cst_20 : f32 to vector<16x1xf32>
    %58 = arith.addf %56, %57 : vector<16x1xf32>
    %59 = math.rsqrt %58 : vector<16x1xf32>
    %60 = vector.broadcast %59 : vector<16x1xf32> to vector<16x128xf32>
    %61 = arith.mulf %51, %60 : vector<16x128xf32>
    %62 = vector.broadcast %41 : vector<1x128xf32> to vector<16x128xf32>
    %63 = arith.mulf %61, %62 : vector<16x128xf32>
    %64 = vector.broadcast %42 : vector<1x128xf32> to vector<16x128xf32>
    %65 = arith.addf %63, %64 : vector<16x128xf32>
    %cst_21 = arith.constant 0.000000e+00 : f32
    %66 = vector.broadcast %cst_21 : f32 to vector<16x128xf32>
    %67 = arith.maximumf %65, %66 : vector<16x128xf32>
    %68 = arith.truncf %67 : vector<16x128xf32> to vector<16x128xbf16>
    %c0_22 = arith.constant 0 : index
    %c0_23 = arith.constant 0 : index
    %69 = vector.load %arg7[%c0_22, %c0_23] : memref<1x128xf32, #tpu.memory_space<vmem>>, vector<1x128xf32>
    %c0_24 = arith.constant 0 : index
    %c0_25 = arith.constant 0 : index
    %70 = vector.load %arg6[%c0_24, %c0_25] : memref<128x128xbf16, #tpu.memory_space<vmem>>, vector<128x128xbf16>
    %cst_26 = arith.constant dense<0.000000e+00> : vector<16x128xf32>
    %71 = tpu.matmul %68, %70, %cst_26 {dimension_numbers = #tpu.dot_dimension_numbers<[1], [0], [0], [1], [0, 0, 1, 1], [], []>} : vector<16x128xbf16>, vector<128x128xbf16>, vector<16x128xf32> -> vector<16x128xf32>
    %72 = vector.broadcast %69 : vector<1x128xf32> to vector<16x128xf32>
    %73 = arith.addf %71, %72 : vector<16x128xf32>
    %c0_27 = arith.constant 0 : index
    %c0_28 = arith.constant 0 : index
    %74 = vector.load %arg8[%c0_27, %c0_28] : memref<16x128xf32, #tpu.memory_space<vmem>>, vector<16x128xf32>
    tpu.vector_store %arg8[%c0_27, %c0_28], %73 {strides = array<i32>} : memref<16x128xf32, #tpu.memory_space<vmem>>, vector<16x128xf32>,
    return
  }
  func.func @transform_0(%arg0: i32) -> (i32, i32) {
    %c0_i32 = arith.constant 0 : i32
    %c0_i32_0 = arith.constant 0 : i32
    return %arg0, %c0_i32 : i32, i32
  }
  func.func @transform_1(%arg0: i32) -> (i32, i32) {
    %c0_i32 = arith.constant 0 : i32
    %c0_i32_0 = arith.constant 0 : i32
    %c0_i32_1 = arith.constant 0 : i32
    return %c0_i32, %c0_i32_0 : i32, i32
  }
  func.func @transform_2(%arg0: i32) -> (i32, i32) {
    %c0_i32 = arith.constant 0 : i32
    %c0_i32_0 = arith.constant 0 : i32
    %c0_i32_1 = arith.constant 0 : i32
    return %c0_i32, %c0_i32_0 : i32, i32
  }
  func.func @transform_3(%arg0: i32) -> (i32, i32) {
    %c0_i32 = arith.constant 0 : i32
    %c0_i32_0 = arith.constant 0 : i32
    %c0_i32_1 = arith.constant 0 : i32
    return %c0_i32, %c0_i32_0 : i32, i32
  }
  func.func @transform_4(%arg0: i32) -> (i32, i32) {
    %c0_i32 = arith.constant 0 : i32
    %c0_i32_0 = arith.constant 0 : i32
    %c0_i32_1 = arith.constant 0 : i32
    return %c0_i32, %c0_i32_0 : i32, i32
  }
  func.func @transform_5(%arg0: i32) -> (i32, i32) {
    %c0_i32 = arith.constant 0 : i32
    %c0_i32_0 = arith.constant 0 : i32
    %c0_i32_1 = arith.constant 0 : i32
    return %c0_i32, %c0_i32_0 : i32, i32
  }
  func.func @transform_6(%arg0: i32) -> (i32, i32) {
    %c0_i32 = arith.constant 0 : i32
    %c0_i32_0 = arith.constant 0 : i32
    %c0_i32_1 = arith.constant 0 : i32
    return %c0_i32, %c0_i32_0 : i32, i32
  }
  func.func @transform_7(%arg0: i32) -> (i32, i32) {
    %c0_i32 = arith.constant 0 : i32
    %c0_i32_0 = arith.constant 0 : i32
    return %arg0, %c0_i32 : i32, i32
  }
}

</mosaic_0001>

<bundles_post_ra>
// kernel: _forward.1
= control target key start
LH: loop header
LB: loop body
LE: loop exit
PB: predicated region body
PF: predicated region fallthrough
CT: control target
= control target key end

     0   :  { %12 = vsyncpa [#allocation3], 0  ;;  %s734_s0 = inlined_call_operand.vmem [shape: bf16[16,128], index: 0, kind: input, shape index: {}]   ;;  %s735_s1 = inlined_call_operand.hbm [shape: bf16[128,128], index: 1, kind: input, shape index: {}]   ;;  %s736_s2 = inlined_call_operand.vmem [shape: f32[4,128], index: 2, kind: input, shape index: {}]   ;;  %s737_s3 = inlined_call_operand.hbm [shape: bf16[128,128], index: 3, kind: input, shape index: {}]   ;;  %s738_s4 = inlined_call_operand.vmem [shape: f32[4,128], index: 4, kind: input, shape index: {}]   ;;  %s739_s5 = inlined_call_operand.hbm [shape: bf16[128,128], index: 5, kind: input, shape index: {}]   ;;  %s740_s6 = inlined_call_operand.vmem [shape: f32[1,128], index: 6, kind: input, shape index: {}]   ;;  %s741_s7 = inlined_call_operand.vmem [shape: f32[16,128], index: 7, kind: output, shape index: {}]  }
   0x1   :  { %13 = vsyncpa [#allocation5], 0  ;;  %s35_s26 = sshll.u32 %s737_s3, 4  ;;  %s650_s27 = smov [#allocation4]   ;;  %s36_s26 = int_to_ptr.hbm [resolvable:$true] %s35_s26 }
   0x2   :  { %s37_s28 = sshll.u32 %s650_s27, 4  ;;  %s20_s8 = sshll.u32 %s735_s1, 4  ;;  %s38_s28 = int_to_ptr.vmem [resolvable:$true] %s37_s28  ;;  %s21_s8 = int_to_ptr.hbm [resolvable:$true] %s20_s8 }
   0x3   :  { %s651_s9 = smov 64   ;;  %s652_s10 = smov 4  }
   0x4   :  { %43 = dma.hbm_to_vmem [thread:$0]  %s36_s26, 1024, %s38_s28, [#allocation5], %s651_s9, %s651_s9, %s652_s10  }
   0x5   :  { %s653_s11 = smov [#allocation2]   ;;  %s50_s15 = sshll.u32 %s739_s5, 4  ;;  %s51_s15 = int_to_ptr.hbm [resolvable:$true] %s50_s15 }
   0x6   :  { %s22_s12 = sshll.u32 %s653_s11, 4  ;;  %s654_s3 = smov [#allocation6]   ;;  %s23_s12 = int_to_ptr.vmem [resolvable:$true] %s22_s12 }
   0x7   :  { %28 = dma.hbm_to_vmem [thread:$0]  %s21_s8, 1024, %s23_s12, [#allocation3], %s651_s9, %s651_s9, %s652_s10  }
   0x8   :  { %s52_s16 = sshll.u32 %s654_s3, 4  ;;  %s53_s16 = int_to_ptr.vmem [resolvable:$true] %s52_s16 }
   0x9   :  { %58 = dma.hbm_to_vmem [thread:$0]  %s51_s15, 1024, %s53_s16, [#allocation5], %s651_s9, %s651_s9, %s652_s10  }
   0xa   :  { %646 = dma.done.wait [#allocation3], 1024  }
   0xb   :  { %647 = vsyncadd [#allocation3], 4294966272 }
   0xc   :  { %648 = dma.done.wait [#allocation5], 2048  }
   0xd   :  { %649 = vsyncadd [#allocation5], 4294965248  ;;  %v543_v0 = vld [vmem:[#allocation2 + $0x38] sm:$0xff]  ;;  %v542_v1 = vld [vmem:[#allocation2 + $0x30] sm:$0xff] }
   0xe   :  { %147 = vmatpush.bf16.msra.mxu0 %v543_v0  ;;  %v541_v2 = vld [vmem:[#allocation2 + $0x28] sm:$0xff]  ;;  %v540_v3 = vld [vmem:[#allocation2 + $0x20] sm:$0xff]  ;;  %v539_v4 = vld [vmem:[#allocation2 + $0x18] sm:$0xff] }
   0xf   :  { %v538_v5 = vld [vmem:[#allocation2 + $0x10] sm:$0xff]  ;;  %v537_v6 = vld [vmem:[#allocation2 + $0x8] sm:$0xff]  ;;  %v536_v7 = vld [vmem:[#allocation2] sm:$0xff] }
  0x10   :  { %v535_v8 = vld [vmem:[%s734_s0] sm:$0xff]  ;;  %v551_v26 = vld [vmem:[#allocation4 + $0x38] sm:$0xff]  ;;  %v550_v27 = vld [vmem:[#allocation4 + $0x30] sm:$0xff] }
  0x11   :  { %v710_v9 = vld [vmem:[%s736_s2] sm:$0xf]  ;;  %279 = vmatpush.bf16.msra.mxu1 %v551_v26  ;;  %v549_v28 = vld [vmem:[#allocation4 + $0x28] sm:$0xff]  ;;  %v547_v30 = vld [vmem:[#allocation4 + $0x18] sm:$0xff] }
  0x12   :  { %148 = vmatpush.bf16.msra.mxu0 %v542_v1  ;;  %v92_v10 = vperm.slane %v710_v9, 0  ;;  %v169_v17 = vperm.slane %v710_v9, 3  ;;  %v548_v29 = vld [vmem:[#allocation4 + $0x20] sm:$0xff]  ;;  %v546_v31 = vld [vmem:[#allocation4 + $0x10] sm:$0xff]  ;;  %v545_v32 = vld [vmem:[#allocation4 + $0x8] sm:$0xff]  ;;  %v204_v52 = vperm.slane %v710_v9, 1 }
  0x13   :  { %v544_v35 = vld [vmem:[#allocation4] sm:$0xff]  ;;  %v207_v56 = vperm.slane %v710_v9, 2 }
  0x14   :  { %v719_v1 = vld [vmem:[%s738_s4] sm:$0xf] }
  0x15   :  { %280 = vmatpush.bf16.msra.mxu1 %v550_v27  ;;  %v301_v9 = vperm.slane %v719_v1, 3  ;;  %v552_v27 = vld [vmem:[#allocation6] sm:$0xff] }
  0x16   :  { %149 = vmatpush.bf16.msra.mxu0 %v541_v2  ;;  %v230_v2 = vperm.slane %v719_v1, 0 }
  0x19   :  { %281 = vmatpush.bf16.msra.mxu1 %v549_v28 }
  0x1a   :  { %150 = vmatpush.bf16.msra.mxu0 %v540_v3 }
  0x1d   :  { %282 = vmatpush.bf16.msra.mxu1 %v548_v29 }
  0x1e   :  { %151 = vmatpush.bf16.msra.mxu0 %v539_v4 }
  0x21   :  { %283 = vmatpush.bf16.msra.mxu1 %v547_v30 }
  0x22   :  { %152 = vmatpush.bf16.msra.mxu0 %v538_v5 }
  0x25   :  { %284 = vmatpush.bf16.msra.mxu1 %v546_v31 }
  0x26   :  { %153 = vmatpush.bf16.msra.mxu0 %v537_v6 }
  0x29   :  { %285 = vmatpush.bf16.msra.mxu1 %v545_v32 }
  0x2a   :  { %154 = vmatpush.bf16.msra.mxu0 %v536_v7 }
  0x2d   :  { %155 = vmatmul.bf16.vlgmr.msra.gmra.mxu0 %v535_v8  ;;  %286 = vmatpush.bf16.msra.mxu1 %v544_v35 }
  0xaa   :  { %v156_v11 = vpop.f32.mrf.mxu0 }
  0xab   :  { %v157_v12 = vadd.f32 %v156_v11, %v92_v10 }
  0xad   :  { %161 = vadd.xlane.f32.xlu0 %v157_v12 }
  0xb2   :  { %v158_v13 = vpop.f32.mrf.mxu0 }
  0xb3   :  { %v159_v14 = vadd.f32 %v158_v13, %v92_v10 }
  0xb5   :  { %163 = vadd.xlane.f32.xlu0 %v159_v14 }
 0x120   :  { %v162_v15 = vpop.xlane.xlu0 %161 }
 0x121   :  { %v165_v16 = vmul.f32 0.03125, %v162_v15 }
 0x123   :  { %v167_v18 = vsub.f32 %v157_v12, %v165_v16 }
 0x125   :  { %v170_v19 = vmul.f32 %v169_v17, %v167_v18  ;;  %v559_v18 = vld [vmem:[#allocation6 + $0x38] sm:$0xff] }
 0x126   :  { %413 = vmatpush.bf16.msra.mxu2 %v559_v18 }
 0x127   :  { %v172_v20 = vmul.f32 %v170_v19, %v170_v19 }
 0x128   :  { %v164_v21 = vpop.xlane.xlu0 %163 }
 0x129   :  { %v166_v22 = vmul.f32 0.03125, %v164_v21  ;;  %174 = vadd.xlane.f32.xlu1 %v172_v20  ;;  %v557_v20 = vld [vmem:[#allocation6 + $0x28] sm:$0xff]  ;;  %v556_v21 = vld [vmem:[#allocation6 + $0x20] sm:$0xff] }
 0x12b   :  { %v168_v23 = vsub.f32 %v159_v14, %v166_v22  ;;  %v555_v22 = vld [vmem:[#allocation6 + $0x18] sm:$0xff] }
 0x12d   :  { %v171_v24 = vmul.f32 %v169_v17, %v168_v23  ;;  %v554_v23 = vld [vmem:[#allocation6 + $0x10] sm:$0xff] }
 0x12f   :  { %v173_v25 = vmul.f32 %v171_v24, %v171_v24 }
 0x131   :  { %176 = vadd.xlane.f32.xlu1 %v173_v25 }
 0x19c   :  { %v175_v33 = vpop.xlane.xlu1 %174 }
 0x19d   :  { %v178_v34 = vmul.f32 0.03125, %v175_v33 }
 0x19f   :  { %v180_v36 = vadd.f32 1e-05, %v178_v34 }
 0x1a1   :  { %566 = vrsqrt.f32 %v180_v36  ;;  %vm188_vm1 = vweird.f32 %v180_v36 }
 0x1a4   :  { %v177_v37 = vpop.xlane.xlu1 %176 }
 0x1a5   :  { %v179_v38 = vmul.f32 0.03125, %v177_v37 }
 0x1a7   :  { %v567_v39 = vpop.eup %566  ;;  %v181_v40 = vadd.f32 1e-05, %v179_v38 }
 0x1a8   :  { %v183_v41 = vmul.f32 %v567_v39, %v180_v36  ;;  %vm189_vm0 = vweird.f32 %v567_v39 }
 0x1a9   :  { %568 = vrsqrt.f32 %v181_v40  ;;  %vm190_vm2 = vmor %vm188_vm1, %vm189_vm0  ;;  %vm198_vm4 = vweird.f32 %v181_v40 }
 0x1aa   :  { %v184_v42 = vmul.f32 %v567_v39, %v183_v41 }
 0x1ac   :  { %v185_v43 = vmul.f32 0.5, %v184_v42 }
 0x1ae   :  { %v186_v44 = vsub.f32 1.5, %v185_v43 }
 0x1af   :  { %v569_v45 = vpop.eup %568 }
 0x1b0   :  { %v187_v46 = vmul.f32 %v567_v39, %v186_v44  ;;  %v193_v47 = vmul.f32 %v569_v45, %v181_v40  ;;  %vm199_vm3 = vweird.f32 %v569_v45  ;;  %v336_v44 = vperm.slane %v719_v1, 1 }
 0x1b1   :  { %vm200_vm5 = vmor %vm198_vm4, %vm199_vm3 }
 0x1b2   :  { %v191_v48 = vsel %vm190_vm2, %v567_v39, %v187_v46  ;;  %v194_v49 = vmul.f32 %v569_v45, %v193_v47 }
 0x1b3   :  { %v202_v51 = vmul.f32 %v191_v48, %v170_v19  ;;  %v558_v19 = vld [vmem:[#allocation6 + $0x30] sm:$0xff]  ;;  %v339_v48 = vperm.slane %v719_v1, 2 }
 0x1b4   :  { %v195_v50 = vmul.f32 0.5, %v194_v49  ;;  %414 = vmatpush.bf16.msra.mxu2 %v558_v19 }
 0x1b5   :  { %v205_v55 = vmul.f32 %v204_v52, %v202_v51 }
 0x1b6   :  { %v196_v53 = vsub.f32 1.5, %v195_v50 }
 0x1b7   :  { %v208_v60 = vadd.f32 %v207_v56, %v205_v55 }
 0x1b8   :  { %v197_v54 = vmul.f32 %v569_v45, %v196_v53  ;;  %415 = vmatpush.bf16.msra.mxu2 %v557_v20 }
 0x1b9   :  { %v210_v62 = vmax.f32 %v208_v60, 0.0 }
 0x1ba   :  { %v201_v57 = vsel %vm200_vm5, %v569_v45, %v197_v54 }
 0x1bb   :  { %v203_v58 = vmul.f32 %v201_v57, %v171_v24  ;;  %v553_v24 = vld [vmem:[#allocation6 + $0x8] sm:$0xff]  ;;  %v565_v57 = vld [vmem:[%s740_s6] ss:$0 sm:$0xff] }
 0x1bc   :  { %416 = vmatpush.bf16.msra.mxu2 %v556_v21 }
 0x1bd   :  { %v206_v59 = vmul.f32 %v204_v52, %v203_v58 }
 0x1bf   :  { %v209_v61 = vadd.f32 %v207_v56, %v206_v59 }
 0x1c0   :  { %417 = vmatpush.bf16.msra.mxu2 %v555_v22 }
 0x1c1   :  { %v211_v63 = vmax.f32 %v209_v61, 0.0 }
 0x1c3   :  { %v212_v0 = vpack.c.bf16 %v211_v63, %v210_v62 }
 0x1c4   :  { %418 = vmatpush.bf16.msra.mxu2 %v554_v23 }
 0x1c5   :  { %287 = vmatmul.bf16.vlgmr.msra.gmra.mxu1 %v212_v0 }
 0x1c8   :  { %419 = vmatpush.bf16.msra.mxu2 %v553_v24 }
 0x1cc   :  { %420 = vmatpush.bf16.msra.mxu2 %v552_v27 }
 0x242   :  { %v288_v3 = vpop.f32.mrf.mxu1 }
 0x243   :  { %v289_v4 = vadd.f32 %v288_v3, %v230_v2 }
 0x245   :  { %293 = vadd.xlane.f32.xlu2 %v289_v4 }
 0x24a   :  { %v290_v5 = vpop.f32.mrf.mxu1 }
 0x24b   :  { %v291_v6 = vadd.f32 %v290_v5, %v230_v2 }
 0x24d   :  { %295 = vadd.xlane.f32.xlu2 %v291_v6 }
 0x2b8   :  { %v294_v7 = vpop.xlane.xlu2 %293 }
 0x2b9   :  { %v297_v8 = vmul.f32 0.03125, %v294_v7 }
 0x2bb   :  { %v299_v10 = vsub.f32 %v289_v4, %v297_v8 }
 0x2bd   :  { %v302_v11 = vmul.f32 %v301_v9, %v299_v10 }
 0x2bf   :  { %v304_v12 = vmul.f32 %v302_v11, %v302_v11 }
 0x2c0   :  { %v296_v13 = vpop.xlane.xlu2 %295 }
 0x2c1   :  { %v298_v14 = vmul.f32 0.03125, %v296_v13  ;;  %306 = vadd.xlane.f32.xlu0 %v304_v12 }
 0x2c3   :  { %v300_v15 = vsub.f32 %v291_v6, %v298_v14 }
 0x2c5   :  { %v303_v16 = vmul.f32 %v301_v9, %v300_v15 }
 0x2c7   :  { %v305_v17 = vmul.f32 %v303_v16, %v303_v16 }
 0x2c9   :  { %308 = vadd.xlane.f32.xlu1 %v305_v17 }
 0x334   :  { %v307_v25 = vpop.xlane.xlu0 %306 }
 0x335   :  { %v310_v26 = vmul.f32 0.03125, %v307_v25 }
 0x337   :  { %v312_v28 = vadd.f32 1e-05, %v310_v26 }
 0x339   :  { %570 = vrsqrt.f32 %v312_v28  ;;  %vm320_vm7 = vweird.f32 %v312_v28 }
 0x33c   :  { %v309_v29 = vpop.xlane.xlu1 %308 }
 0x33d   :  { %v311_v30 = vmul.f32 0.03125, %v309_v29 }
 0x33f   :  { %v571_v31 = vpop.eup %570  ;;  %v313_v32 = vadd.f32 1e-05, %v311_v30 }
 0x340   :  { %v315_v33 = vmul.f32 %v571_v31, %v312_v28  ;;  %vm321_vm6 = vweird.f32 %v571_v31 }
 0x341   :  { %572 = vrsqrt.f32 %v313_v32  ;;  %vm322_vm8 = vmor %vm320_vm7, %vm321_vm6  ;;  %vm330_vm10 = vweird.f32 %v313_v32 }
 0x342   :  { %v316_v34 = vmul.f32 %v571_v31, %v315_v33 }
 0x344   :  { %v317_v35 = vmul.f32 0.5, %v316_v34 }
 0x346   :  { %v318_v36 = vsub.f32 1.5, %v317_v35 }
 0x347   :  { %v573_v37 = vpop.eup %572 }
 0x348   :  { %v319_v38 = vmul.f32 %v571_v31, %v318_v36  ;;  %v325_v39 = vmul.f32 %v573_v37, %v313_v32  ;;  %vm331_vm9 = vweird.f32 %v573_v37 }
 0x349   :  { %vm332_vm11 = vmor %vm330_vm10, %vm331_vm9 }
 0x34a   :  { %v323_v40 = vsel %vm322_vm8, %v571_v31, %v319_v38  ;;  %v326_v41 = vmul.f32 %v573_v37, %v325_v39 }
 0x34b   :  { %v334_v43 = vmul.f32 %v323_v40, %v302_v11 }
 0x34c   :  { %v327_v42 = vmul.f32 0.5, %v326_v41 }
 0x34d   :  { %v337_v47 = vmul.f32 %v336_v44, %v334_v43 }
 0x34e   :  { %v328_v45 = vsub.f32 1.5, %v327_v42 }
 0x34f   :  { %v340_v52 = vadd.f32 %v339_v48, %v337_v47 }
 0x350   :  { %v329_v46 = vmul.f32 %v573_v37, %v328_v45 }
 0x351   :  { %v342_v54 = vmax.f32 %v340_v52, 0.0 }
 0x352   :  { %v333_v49 = vsel %vm332_vm11, %v573_v37, %v329_v46 }
 0x353   :  { %v335_v50 = vmul.f32 %v333_v49, %v303_v16 }
 0x355   :  { %v338_v51 = vmul.f32 %v336_v44, %v335_v50 }
 0x357   :  { %v341_v53 = vadd.f32 %v339_v48, %v338_v51 }
 0x359   :  { %v343_v55 = vmax.f32 %v341_v53, 0.0 }
 0x35b   :  { %v344_v56 = vpack.c.bf16 %v343_v55, %v342_v54 }
 0x35d   :  { %421 = vmatmul.bf16.vlgmr.msra.gmra.mxu2 %v344_v56 }
 0x3e0   :  { %v422_v58 = vpop.f32.mrf.mxu2 }
 0x3e1   :  { %v423_v59 = vadd.f32 %v565_v57, %v422_v58 }
 0x3e3   :  { %427 = vst [vmem:[%s741_s7] sm:$0xff] %v423_v59 }
 0x3e8   :  { %v424_v60 = vpop.f32.mrf.mxu2 }
 0x3e9   :  { %v425_v61 = vadd.f32 %v565_v57, %v424_v60 }
 0x3eb   :  { %428 = vst [vmem:[%s741_s7 + $0x8] sm:$0xff] %v425_v61 }
 0x3ec   :  { %433 = vsyncpa [#allocation3], 1 }
 0x3ed   :  { %434 = vsyncpa [#allocation5], 1 }

// kernel: _forward.1
= control target key start
LH: loop header
LB: loop body
LE: loop exit
PB: predicated region body
PF: predicated region fallthrough
CT: control target
= control target key end

     0   :  { %12 = vsyncpa [#allocation3], 0  ;;  %s734_s0 = inlined_call_operand.vmem [shape: bf16[16,128], index: 0, kind: input, shape index: {}]   ;;  %s735_s1 = inlined_call_operand.hbm [shape: bf16[128,128], index: 1, kind: input, shape index: {}]   ;;  %s736_s2 = inlined_call_operand.vmem [shape: f32[4,128], index: 2, kind: input, shape index: {}]   ;;  %s737_s3 = inlined_call_operand.hbm [shape: bf16[128,128], index: 3, kind: input, shape index: {}]   ;;  %s738_s4 = inlined_call_operand.vmem [shape: f32[4,128], index: 4, kind: input, shape index: {}]   ;;  %s739_s5 = inlined_call_operand.hbm [shape: bf16[128,128], index: 5, kind: input, shape index: {}]   ;;  %s740_s6 = inlined_call_operand.vmem [shape: f32[1,128], index: 6, kind: input, shape index: {}]   ;;  %s741_s7 = inlined_call_operand.vmem [shape: f32[16,128], index: 7, kind: output, shape index: {}]  }
   0x1   :  { %13 = vsyncpa [#allocation5], 0  ;;  %s35_s26 = sshll.u32 %s737_s3, 4  ;;  %s650_s27 = smov [#allocation4]   ;;  %s36_s26 = int_to_ptr.hbm [resolvable:$true] %s35_s26 }
   0x2   :  { %s37_s28 = sshll.u32 %s650_s27, 4  ;;  %s20_s8 = sshll.u32 %s735_s1, 4  ;;  %s38_s28 = int_to_ptr.vmem [resolvable:$true] %s37_s28  ;;  %s21_s8 = int_to_ptr.hbm [resolvable:$true] %s20_s8 }
   0x3   :  { %s651_s9 = smov 64   ;;  %s652_s10 = smov 4  }
   0x4   :  { %43 = dma.hbm_to_vmem [thread:$0]  %s36_s26, 1024, %s38_s28, [#allocation5], %s651_s9, %s651_s9, %s652_s10  }
   0x5   :  { %s653_s11 = smov [#allocation2]   ;;  %s50_s15 = sshll.u32 %s739_s5, 4  ;;  %s51_s15 = int_to_ptr.hbm [resolvable:$true] %s50_s15 }
   0x6   :  { %s22_s12 = sshll.u32 %s653_s11, 4  ;;  %s654_s3 = smov [#allocation6]   ;;  %s23_s12 = int_to_ptr.vmem [resolvable:$true] %s22_s12 }
   0x7   :  { %28 = dma.hbm_to_vmem [thread:$0]  %s21_s8, 1024, %s23_s12, [#allocation3], %s651_s9, %s651_s9, %s652_s10  }
   0x8   :  { %s52_s16 = sshll.u32 %s654_s3, 4  ;;  %s53_s16 = int_to_ptr.vmem [resolvable:$true] %s52_s16 }
   0x9   :  { %58 = dma.hbm_to_vmem [thread:$0]  %s51_s15, 1024, %s53_s16, [#allocation5], %s651_s9, %s651_s9, %s652_s10  }
   0xa   :  { %646 = dma.done.wait [#allocation3], 1024  }
   0xb   :  { %647 = vsyncadd [#allocation3], 4294966272 }
   0xc   :  { %648 = dma.done.wait [#allocation5], 2048  }
   0xd   :  { %649 = vsyncadd [#allocation5], 4294965248  ;;  %v543_v0 = vld [vmem:[#allocation2 + $0x38] sm:$0xff]  ;;  %v542_v1 = vld [vmem:[#allocation2 + $0x30] sm:$0xff] }
   0xe   :  { %147 = vmatpush.bf16.msra.mxu0 %v543_v0  ;;  %v541_v2 = vld [vmem:[#allocation2 + $0x28] sm:$0xff]  ;;  %v540_v3 = vld [vmem:[#allocation2 + $0x20] sm:$0xff]  ;;  %v539_v4 = vld [vmem:[#allocation2 + $0x18] sm:$0xff] }
   0xf   :  { %v538_v5 = vld [vmem:[#allocation2 + $0x10] sm:$0xff]  ;;  %v537_v6 = vld [vmem:[#allocation2 + $0x8] sm:$0xff]  ;;  %v536_v7 = vld [vmem:[#allocation2] sm:$0xff] }
  0x10   :  { %v535_v8 = vld [vmem:[%s734_s0] sm:$0xff]  ;;  %v551_v26 = vld [vmem:[#allocation4 + $0x38] sm:$0xff]  ;;  %v550_v27 = vld [vmem:[#allocation4 + $0x30] sm:$0xff] }
  0x11   :  { %v710_v9 = vld [vmem:[%s736_s2] sm:$0xf]  ;;  %279 = vmatpush.bf16.msra.mxu1 %v551_v26  ;;  %v549_v28 = vld [vmem:[#allocation4 + $0x28] sm:$0xff]  ;;  %v547_v30 = vld [vmem:[#allocation4 + $0x18] sm:$0xff] }
  0x12   :  { %148 = vmatpush.bf16.msra.mxu0 %v542_v1  ;;  %v92_v10 = vperm.slane %v710_v9, 0  ;;  %v169_v17 = vperm.slane %v710_v9, 3  ;;  %v548_v29 = vld [vmem:[#allocation4 + $0x20] sm:$0xff]  ;;  %v546_v31 = vld [vmem:[#allocation4 + $0x10] sm:$0xff]  ;;  %v545_v32 = vld [vmem:[#allocation4 + $0x8] sm:$0xff]  ;;  %v204_v52 = vperm.slane %v710_v9, 1 }
  0x13   :  { %v544_v35 = vld [vmem:[#allocation4] sm:$0xff]  ;;  %v207_v56 = vperm.slane %v710_v9, 2 }
  0x14   :  { %v719_v1 = vld [vmem:[%s738_s4] sm:$0xf] }
  0x15   :  { %280 = vmatpush.bf16.msra.mxu1 %v550_v27  ;;  %v301_v9 = vperm.slane %v719_v1, 3  ;;  %v552_v27 = vld [vmem:[#allocation6] sm:$0xff] }
  0x16   :  { %149 = vmatpush.bf16.msra.mxu0 %v541_v2  ;;  %v230_v2 = vperm.slane %v719_v1, 0 }
  0x19   :  { %281 = vmatpush.bf16.msra.mxu1 %v549_v28 }
  0x1a   :  { %150 = vmatpush.bf16.msra.mxu0 %v540_v3 }
  0x1d   :  { %282 = vmatpush.bf16.msra.mxu1 %v548_v29 }
  0x1e   :  { %151 = vmatpush.bf16.msra.mxu0 %v539_v4 }
  0x21   :  { %283 = vmatpush.bf16.msra.mxu1 %v547_v30 }
  0x22   :  { %152 = vmatpush.bf16.msra.mxu0 %v538_v5 }
  0x25   :  { %284 = vmatpush.bf16.msra.mxu1 %v546_v31 }
  0x26   :  { %153 = vmatpush.bf16.msra.mxu0 %v537_v6 }
  0x29   :  { %285 = vmatpush.bf16.msra.mxu1 %v545_v32 }
  0x2a   :  { %154 = vmatpush.bf16.msra.mxu0 %v536_v7 }
  0x2d   :  { %155 = vmatmul.bf16.vlgmr.msra.gmra.mxu0 %v535_v8  ;;  %286 = vmatpush.bf16.msra.mxu1 %v544_v35 }
  0xaa   :  { %v156_v11 = vpop.f32.mrf.mxu0 }
  0xab   :  { %v157_v12 = vadd.f32 %v156_v11, %v92_v10 }
  0xad   :  { %161 = vadd.xlane.f32.xlu0 %v157_v12 }
  0xb2   :  { %v158_v13 = vpop.f32.mrf.mxu0 }
  0xb3   :  { %v159_v14 = vadd.f32 %v158_v13, %v92_v10 }
  0xb5   :  { %163 = vadd.xlane.f32.xlu0 %v159_v14 }
 0x120   :  { %v162_v15 = vpop.xlane.xlu0 %161 }
 0x121   :  { %v165_v16 = vmul.f32 0.03125, %v162_v15 }
 0x123   :  { %v167_v18 = vsub.f32 %v157_v12, %v165_v16 }
 0x125   :  { %v170_v19 = vmul.f32 %v169_v17, %v167_v18  ;;  %v559_v18 = vld [vmem:[#allocation6 + $0x38] sm:$0xff] }
 0x126   :  { %413 = vmatpush.bf16.msra.mxu2 %v559_v18 }
 0x127   :  { %v172_v20 = vmul.f32 %v170_v19, %v170_v19 }
 0x128   :  { %v164_v21 = vpop.xlane.xlu0 %163 }
 0x129   :  { %v166_v22 = vmul.f32 0.03125, %v164_v21  ;;  %174 = vadd.xlane.f32.xlu1 %v172_v20  ;;  %v557_v20 = vld [vmem:[#allocation6 + $0x28] sm:$0xff]  ;;  %v556_v21 = vld [vmem:[#allocation6 + $0x20] sm:$0xff] }
 0x12b   :  { %v168_v23 = vsub.f32 %v159_v14, %v166_v22  ;;  %v555_v22 = vld [vmem:[#allocation6 + $0x18] sm:$0xff] }
 0x12d   :  { %v171_v24 = vmul.f32 %v169_v17, %v168_v23  ;;  %v554_v23 = vld [vmem:[#allocation6 + $0x10] sm:$0xff] }
 0x12f   :  { %v173_v25 = vmul.f32 %v171_v24, %v171_v24 }
 0x131   :  { %176 = vadd.xlane.f32.xlu1 %v173_v25 }
 0x19c   :  { %v175_v33 = vpop.xlane.xlu1 %174 }
 0x19d   :  { %v178_v34 = vmul.f32 0.03125, %v175_v33 }
 0x19f   :  { %v180_v36 = vadd.f32 1e-05, %v178_v34 }
 0x1a1   :  { %566 = vrsqrt.f32 %v180_v36  ;;  %vm188_vm1 = vweird.f32 %v180_v36 }
 0x1a4   :  { %v177_v37 = vpop.xlane.xlu1 %176 }
 0x1a5   :  { %v179_v38 = vmul.f32 0.03125, %v177_v37 }
 0x1a7   :  { %v567_v39 = vpop.eup %566  ;;  %v181_v40 = vadd.f32 1e-05, %v179_v38 }
 0x1a8   :  { %v183_v41 = vmul.f32 %v567_v39, %v180_v36  ;;  %vm189_vm0 = vweird.f32 %v567_v39 }
 0x1a9   :  { %568 = vrsqrt.f32 %v181_v40  ;;  %vm190_vm2 = vmor %vm188_vm1, %vm189_vm0  ;;  %vm198_vm4 = vweird.f32 %v181_v40 }
 0x1aa   :  { %v184_v42 = vmul.f32 %v567_v39, %v183_v41 }
 0x1ac   :  { %v185_v43 = vmul.f32 0.5, %v184_v42 }
 0x1ae   :  { %v186_v44 = vsub.f32 1.5, %v185_v43 }
 0x1af   :  { %v569_v45 = vpop.eup %568 }
 0x1b0   :  { %v187_v46 = vmul.f32 %v567_v39, %v186_v44  ;;  %v193_v47 = vmul.f32 %v569_v45, %v181_v40  ;;  %vm199_vm3 = vweird.f32 %v569_v45  ;;  %v336_v44 = vperm.slane %v719_v1, 1 }
 0x1b1   :  { %vm200_vm5 = vmor %vm198_vm4, %vm199_vm3 }
 0x1b2   :  { %v191_v48 = vsel %vm190_vm2, %v567_v39, %v187_v46  ;;  %v194_v49 = vmul.f32 %v569_v45, %v193_v47 }
 0x1b3   :  { %v202_v51 = vmul.f32 %v191_v48, %v170_v19  ;;  %v558_v19 = vld [vmem:[#allocation6 + $0x30] sm:$0xff]  ;;  %v339_v48 = vperm.slane %v719_v1, 2 }
 0x1b4   :  { %v195_v50 = vmul.f32 0.5, %v194_v49  ;;  %414 = vmatpush.bf16.msra.mxu2 %v558_v19 }
 0x1b5   :  { %v205_v55 = vmul.f32 %v204_v52, %v202_v51 }
 0x1b6   :  { %v196_v53 = vsub.f32 1.5, %v195_v50 }
 0x1b7   :  { %v208_v60 = vadd.f32 %v207_v56, %v205_v55 }
 0x1b8   :  { %v197_v54 = vmul.f32 %v569_v45, %v196_v53  ;;  %415 = vmatpush.bf16.msra.mxu2 %v557_v20 }
 0x1b9   :  { %v210_v62 = vmax.f32 %v208_v60, 0.0 }
 0x1ba   :  { %v201_v57 = vsel %vm200_vm5, %v569_v45, %v197_v54 }
 0x1bb   :  { %v203_v58 = vmul.f32 %v201_v57, %v171_v24  ;;  %v553_v24 = vld [vmem:[#allocation6 + $0x8] sm:$0xff]  ;;  %v565_v57 = vld [vmem:[%s740_s6] ss:$0 sm:$0xff] }
 0x1bc   :  { %416 = vmatpush.bf16.msra.mxu2 %v556_v21 }
 0x1bd   :  { %v206_v59 = vmul.f32 %v204_v52, %v203_v58 }
 0x1bf   :  { %v209_v61 = vadd.f32 %v207_v56, %v206_v59 }
 0x1c0   :  { %417 = vmatpush.bf16.msra.mxu2 %v555_v22 }
 0x1c1   :  { %v211_v63 = vmax.f32 %v209_v61, 0.0 }
 0x1c3   :  { %v212_v0 = vpack.c.bf16 %v211_v63, %v210_v62 }
 0x1c4   :  { %418 = vmatpush.bf16.msra.mxu2 %v554_v23 }
 0x1c5   :  { %287 = vmatmul.bf16.vlgmr.msra.gmra.mxu1 %v212_v0 }
 0x1c8   :  { %419 = vmatpush.bf16.msra.mxu2 %v553_v24 }
 0x1cc   :  { %420 = vmatpush.bf16.msra.mxu2 %v552_v27 }
 0x242   :  { %v288_v3 = vpop.f32.mrf.mxu1 }
 0x243   :  { %v289_v4 = vadd.f32 %v288_v3, %v230_v2 }
 0x245   :  { %293 = vadd.xlane.f32.xlu2 %v289_v4 }
 0x24a   :  { %v290_v5 = vpop.f32.mrf.mxu1 }
 0x24b   :  { %v291_v6 = vadd.f32 %v290_v5, %v230_v2 }
 0x24d   :  { %295 = vadd.xlane.f32.xlu2 %v291_v6 }
 0x2b8   :  { %v294_v7 = vpop.xlane.xlu2 %293 }
 0x2b9   :  { %v297_v8 = vmul.f32 0.03125, %v294_v7 }
 0x2bb   :  { %v299_v10 = vsub.f32 %v289_v4, %v297_v8 }
 0x2bd   :  { %v302_v11 = vmul.f32 %v301_v9, %v299_v10 }
 0x2bf   :  { %v304_v12 = vmul.f32 %v302_v11, %v302_v11 }
 0x2c0   :  { %v296_v13 = vpop.xlane.xlu2 %295 }
 0x2c1   :  { %v298_v14 = vmul.f32 0.03125, %v296_v13  ;;  %306 = vadd.xlane.f32.xlu0 %v304_v12 }
 0x2c3   :  { %v300_v15 = vsub.f32 %v291_v6, %v298_v14 }
 0x2c5   :  { %v303_v16 = vmul.f32 %v301_v9, %v300_v15 }
 0x2c7   :  { %v305_v17 = vmul.f32 %v303_v16, %v303_v16 }
 0x2c9   :  { %308 = vadd.xlane.f32.xlu1 %v305_v17 }
 0x334   :  { %v307_v25 = vpop.xlane.xlu0 %306 }
 0x335   :  { %v310_v26 = vmul.f32 0.03125, %v307_v25 }
 0x337   :  { %v312_v28 = vadd.f32 1e-05, %v310_v26 }
 0x339   :  { %570 = vrsqrt.f32 %v312_v28  ;;  %vm320_vm7 = vweird.f32 %v312_v28 }
 0x33c   :  { %v309_v29 = vpop.xlane.xlu1 %308 }
 0x33d   :  { %v311_v30 = vmul.f32 0.03125, %v309_v29 }
 0x33f   :  { %v571_v31 = vpop.eup %570  ;;  %v313_v32 = vadd.f32 1e-05, %v311_v30 }
 0x340   :  { %v315_v33 = vmul.f32 %v571_v31, %v312_v28  ;;  %vm321_vm6 = vweird.f32 %v571_v31 }
 0x341   :  { %572 = vrsqrt.f32 %v313_v32  ;;  %vm322_vm8 = vmor %vm320_vm7, %vm321_vm6  ;;  %vm330_vm10 = vweird.f32 %v313_v32 }
 0x342   :  { %v316_v34 = vmul.f32 %v571_v31, %v315_v33 }
 0x344   :  { %v317_v35 = vmul.f32 0.5, %v316_v34 }
 0x346   :  { %v318_v36 = vsub.f32 1.5, %v317_v35 }
 0x347   :  { %v573_v37 = vpop.eup %572 }
 0x348   :  { %v319_v38 = vmul.f32 %v571_v31, %v318_v36  ;;  %v325_v39 = vmul.f32 %v573_v37, %v313_v32  ;;  %vm331_vm9 = vweird.f32 %v573_v37 }
 0x349   :  { %vm332_vm11 = vmor %vm330_vm10, %vm331_vm9 }
 0x34a   :  { %v323_v40 = vsel %vm322_vm8, %v571_v31, %v319_v38  ;;  %v326_v41 = vmul.f32 %v573_v37, %v325_v39 }
 0x34b   :  { %v334_v43 = vmul.f32 %v323_v40, %v302_v11 }
 0x34c   :  { %v327_v42 = vmul.f32 0.5, %v326_v41 }
 0x34d   :  { %v337_v47 = vmul.f32 %v336_v44, %v334_v43 }
 0x34e   :  { %v328_v45 = vsub.f32 1.5, %v327_v42 }
 0x34f   :  { %v340_v52 = vadd.f32 %v339_v48, %v337_v47 }
 0x350   :  { %v329_v46 = vmul.f32 %v573_v37, %v328_v45 }
 0x351   :  { %v342_v54 = vmax.f32 %v340_v52, 0.0 }
 0x352   :  { %v333_v49 = vsel %vm332_vm11, %v573_v37, %v329_v46 }
 0x353   :  { %v335_v50 = vmul.f32 %v333_v49, %v303_v16 }
 0x355   :  { %v338_v51 = vmul.f32 %v336_v44, %v335_v50 }
 0x357   :  { %v341_v53 = vadd.f32 %v339_v48, %v338_v51 }
 0x359   :  { %v343_v55 = vmax.f32 %v341_v53, 0.0 }
 0x35b   :  { %v344_v56 = vpack.c.bf16 %v343_v55, %v342_v54 }
 0x35d   :  { %421 = vmatmul.bf16.vlgmr.msra.gmra.mxu2 %v344_v56 }
 0x3e0   :  { %v422_v58 = vpop.f32.mrf.mxu2 }
 0x3e1   :  { %v423_v59 = vadd.f32 %v565_v57, %v422_v58 }
 0x3e3   :  { %427 = vst [vmem:[%s741_s7] sm:$0xff] %v423_v59 }
 0x3e8   :  { %v424_v60 = vpop.f32.mrf.mxu2 }
 0x3e9   :  { %v425_v61 = vadd.f32 %v565_v57, %v424_v60 }
 0x3eb   :  { %428 = vst [vmem:[%s741_s7 + $0x8] sm:$0xff] %v425_v61 }
 0x3ec   :  { %433 = vsyncpa [#allocation3], 1 }
 0x3ed   :  { %434 = vsyncpa [#allocation5], 1 }

</bundles_post_ra>
